<compile_context>
chip_gen: v6e
topology: v6e:2x2x1
jax: 0.10.0
libtpu: 0.0.40
codegen_flags: <defaults>
</compile_context>

<pallas_src>
import functools

import jax
import jax.numpy as jnp
from jax.experimental import pallas as pl
from jax.experimental.pallas import tpu as pltpu


def _round_up(x, n):
    return ((x + n - 1) // n) * n


def _angular_loss_kernel(lab_ref, num_ref, wf_ref, out_ref, sum_acc,
                         *, s, num_classes):
    j = pl.program_id(1)                              # class (reduction) grid index

    @pl.when(j == 0)
    def _init():
        sum_acc[...] = jnp.zeros_like(sum_acc)

    wf = wf_ref[...].astype(jnp.float32)              # (TB, TC), upcast in-kernel
    labels = lab_ref[...]                             # (TB, 1) int32
    tb, tc = wf.shape

    # Global class index of each element in this tile.
    col = j * tc + jax.lax.broadcasted_iota(jnp.int32, (tb, tc), 1)
    keep = col != labels                              # exclude the target column
    if num_classes % tc != 0:                         # mask the ragged class edge
        keep = keep & (col < num_classes)

    # Direct masked accumulation of sum_{j != label} exp(s * wf[i, j]);
    # matches the PyTorch reference (no cancellation-prone subtraction).
    e = jnp.where(keep, jnp.exp(s * wf), 0.0)
    sum_acc[...] += jnp.sum(e, axis=1, keepdims=True)

    @pl.when(j == pl.num_programs(1) - 1)
    def _finalize():
        numerator = num_ref[...]                      # (TB, 1), precomputed
        denominator = jnp.exp(numerator) + sum_acc[...]
        out_ref[...] = numerator - jnp.log(denominator)   # per-row L


def angular_penalty_sm_loss(wf, labels, loss_type="cosface", eps=1e-7, s=None, m=None,
                            block_b=None, block_c=None):
    loss_type = loss_type.lower()
    assert loss_type in ["arcface", "sphereface", "cosface", "crossentropy"]

    if loss_type == "crossentropy":
        # TODO(synk): plain-JAX glue for the crossentropy branch (no angular math).
        logits = wf.astype(jnp.float32)
        logz = jax.nn.logsumexp(logits, axis=1)
        picked = jnp.take_along_axis(
            logits, labels[:, None].astype(jnp.int32), axis=1)[:, 0]
        return jnp.mean(logz - picked)

    # Explicit None checks (PyTorch uses truthiness, which also swallows s=0/m=0).
    if loss_type == "arcface":
        s_val = 64.0 if s is None else float(s)
        m_val = 0.5 if m is None else float(m)
    elif loss_type == "sphereface":
        s_val = 64.0 if s is None else float(s)
        m_val = 1.35 if m is None else float(m)
    else:  # cosface
        s_val = 30.0 if s is None else float(s)
        m_val = 0.4 if m is None else float(m)

    B, C = wf.shape
    itemsize = jnp.dtype(wf.dtype).itemsize
    labels_2d = labels.astype(jnp.int32).reshape(B, 1)

    # Hoisted O(B) work: target-logit gather (native dtype) + angular numerator.
    target = jnp.take_along_axis(wf, labels_2d, axis=1).astype(jnp.float32)  # (B, 1)
    if loss_type == "cosface":
        numerator = s_val * (target - m_val)
    elif loss_type == "arcface":
        numerator = s_val * jnp.cos(
            jnp.arccos(jnp.clip(target, -1.0 + eps, 1.0 - eps)) + m_val)
    else:  # sphereface
        numerator = s_val * jnp.cos(
            m_val * jnp.arccos(jnp.clip(target, -1.0 + eps, 1.0 - eps)))
    numerator = numerator.astype(jnp.float32)

    # Tile selection: (8,128)-aligned; up to 256x8192 f32 = 8 MiB per step
    # (amortizes ~0.35us/step overhead) and <= ~20 MiB double-buffered, safe on
    # v5e/v6e (128 MiB VMEM) and v7x (64 MiB/TC).
    if block_b is None:
        TB = min(256, _round_up(B, 8))
        # v7x has 2 TensorCores sharing the 'parallel' batch axis: ensure >= 2
        # batch tiles when the batch size allows it.
        if B > 8 and pl.cdiv(B, TB) < 2:
            TB = _round_up(pl.cdiv(B, 2), 8)
    else:
        TB = _round_up(int(block_b), 8)
    if block_c is None:
        TC = min(8192, _round_up(C, 128))
    else:
        TC = _round_up(int(block_c), 128)

    grid = (pl.cdiv(B, TB), pl.cdiv(C, TC))

    kernel = functools.partial(_angular_loss_kernel, s=s_val, num_classes=C)

    # Enough for double-buffered wf tiles + slack, under v7x's 64 MiB physical.
    vmem_limit = int(min(48 * 1024 * 1024,
                         max(16 * 1024 * 1024,
                             2 * TB * TC * itemsize + 4 * 1024 * 1024)))

    per_row_L = pl.pallas_call(
        kernel,
        out_shape=jax.ShapeDtypeStruct((B, 1), jnp.float32),
        grid_spec=pltpu.PrefetchScalarGridSpec(
            num_scalar_prefetch=0,
            grid=grid,
            in_specs=[
                pl.BlockSpec((TB, 1), lambda i, j: (i, 0)),    # labels (int32)
                pl.BlockSpec((TB, 1), lambda i, j: (i, 0)),    # numerator (f32)
                pl.BlockSpec((TB, TC), lambda i, j: (i, j)),   # wf (native dtype)
            ],
            out_specs=pl.BlockSpec((TB, 1), lambda i, j: (i, 0)),
            scratch_shapes=[
                pltpu.VMEM((TB, 1), jnp.float32),   # running exclusive exp-sum
            ],
        ),
        compiler_params=pltpu.CompilerParams(
            dimension_semantics=("parallel", "arbitrary"),
            vmem_limit_bytes=vmem_limit,
        ),
        cost_estimate=pl.CostEstimate(
            flops=4 * B * C,
            transcendentals=B * C,
            bytes_accessed=B * C * itemsize + 3 * B * 4,
        ),
    )(labels_2d, numerator, wf)

    return -jnp.mean(per_row_L[:, 0])


def _reference(wf, labels, loss_type="cosface", eps=1e-7, s=30.0, m=0.4):
    wf = wf.astype(jnp.float32)
    C = wf.shape[1]
    target = jnp.take_along_axis(wf, labels[:, None].astype(jnp.int32), axis=1)[:, 0]
    if loss_type == "cosface":
        numerator = s * (target - m)
    elif loss_type == "arcface":
        numerator = s * jnp.cos(jnp.arccos(jnp.clip(target, -1.0 + eps, 1.0 - eps)) + m)
    else:  # sphereface
        numerator = s * jnp.cos(m * jnp.arccos(jnp.clip(target, -1.0 + eps, 1.0 - eps)))
    onehot = jax.nn.one_hot(labels, C, dtype=jnp.float32)
    sum_excl = jnp.sum(jnp.exp(s * wf) * (1.0 - onehot), axis=1)
    denom = jnp.exp(numerator) + sum_excl
    return -jnp.mean(numerator - jnp.log(denom))


if __name__ == "__main__":
    key = jax.random.PRNGKey(0)

    # (B, C, loss_type, s, m, block_b, block_c). The block overrides exercise
    # multi-tile batch / class grids (incl. ragged edges) at small shapes.
    configs = [
        (8, 16, "cosface", 30.0, 0.4, None, None),
        (6, 20, "arcface", 64.0, 0.5, None, None),      # ragged rows & cols
        (8, 16, "sphereface", 64.0, 1.35, None, None),
        (24, 300, "cosface", 30.0, 0.4, 8, 128),        # 3 i-tiles, 3 j-tiles (ragged C)
        (16, 256, "arcface", 64.0, 0.5, 8, 128),        # multi-tile, exact C
    ]

    for (B, C, lt, s_ref, m_ref, bb, bc) in configs:
        key, kw, kl = jax.random.split(key, 3)
        # wf is a cosine-similarity matrix in [-1, 1]
        wf = jnp.tanh(jax.random.normal(kw, (B, C), dtype=jnp.float32))
        labels = jax.random.randint(kl, (B,), 0, C, dtype=jnp.int32)

        loss = angular_penalty_sm_loss(wf, labels, loss_type=lt,
                                       block_b=bb, block_c=bc)
        loss = jax.block_until_ready(loss)

        ref = _reference(wf, labels, loss_type=lt, s=s_ref, m=m_ref)
        assert jnp.isfinite(loss), f"[{lt}] loss is not finite"
        assert jnp.allclose(loss, ref, rtol=1e-5, atol=1e-5), \
            (lt, B, C, float(loss), float(ref))

    print("KERNEL_OK")
</pallas_src>

<mosaic_0001>
module attributes {stable_mosaic.version = 11 : i64} {
  func.func @_angular_loss_kernel(%arg0: i32, %arg1: i32, %arg2: memref<8x1xi32, #tpu.memory_space<vmem>>, %arg3: memref<8x1xf32, #tpu.memory_space<vmem>>, %arg4: memref<8x128xf32, #tpu.memory_space<vmem>>, %arg5: memref<8x1xf32, #tpu.memory_space<vmem>>, %arg6: memref<8x1xf32, #tpu.memory_space<vmem>>) attributes {dimension_semantics = [#tpu.dimension_semantics<parallel>, #tpu.dimension_semantics<arbitrary>], iteration_bounds = array<i64: 1, 1>, scalar_prefetch = 0 : i64, scratch_operands = 1 : i64, tpu.core_type = #tpu.core_type<tc>, window_params = [{transform_indices = @transform_0, window_bounds = array<i64: 8, 1>}, {transform_indices = @transform_1, window_bounds = array<i64: 8, 1>}, {transform_indices = @transform_2, window_bounds = array<i64: 8, 128>}, {transform_indices = @transform_3, window_bounds = array<i64: 8, 1>}]} {
    %c0_i32 = arith.constant 0 : i32
    %0 = arith.cmpi eq, %arg1, %c0_i32 : i32
    %1 = arith.extui %0 : i1 to i32
    %c0_i32_0 = arith.constant 0 : i32
    %2 = arith.cmpi ne, %1, %c0_i32_0 : i32
    scf.if %2 {
      %cst_12 = arith.constant 0.000000e+00 : f32
      %27 = vector.broadcast %cst_12 : f32 to vector<8x1xf32>
      %c0_13 = arith.constant 0 : index
      %c0_14 = arith.constant 0 : index
      %28 = vector.load %arg6[%c0_13, %c0_14] : memref<8x1xf32, #tpu.memory_space<vmem>>, vector<8x1xf32>
      tpu.vector_store %arg6[%c0_13, %c0_14], %27 {strides = array<i32>} : memref<8x1xf32, #tpu.memory_space<vmem>>, vector<8x1xf32>,
    } else {
    }
    %c0 = arith.constant 0 : index
    %c0_1 = arith.constant 0 : index
    %3 = vector.load %arg4[%c0, %c0_1] : memref<8x128xf32, #tpu.memory_space<vmem>>, vector<8x128xf32>
    %c0_2 = arith.constant 0 : index
    %c0_3 = arith.constant 0 : index
    %4 = vector.load %arg2[%c0_2, %c0_3] : memref<8x1xi32, #tpu.memory_space<vmem>>, vector<8x1xi32>
    %c128_i32 = arith.constant 128 : i32
    %5 = arith.muli %arg1, %c128_i32 : i32
    %6 = tpu.iota {dimensions = array<i32: 1>} : vector<8x128xi32>
    %7 = vector.broadcast %5 : i32 to vector<8x128xi32>
    %8 = arith.addi %7, %6 : vector<8x128xi32>
    %9 = vector.broadcast %4 : vector<8x1xi32> to vector<8x128xi32>
    %10 = arith.cmpi ne, %8, %9 : vector<8x128xi32>
    %c16_i32 = arith.constant 16 : i32
    %11 = vector.broadcast %c16_i32 : i32 to vector<8x128xi32>
    %12 = arith.cmpi slt, %8, %11 : vector<8x128xi32>
    %13 = arith.andi %10, %12 : vector<8x128xi1>
    %cst = arith.constant 3.000000e+01 : f32
    %14 = vector.broadcast %cst : f32 to vector<8x128xf32>
    %15 = arith.mulf %14, %3 : vector<8x128xf32>
    %16 = math.exp %15 : vector<8x128xf32>
    %cst_4 = arith.constant 0.000000e+00 : f32
    %17 = vector.broadcast %cst_4 : f32 to vector<8x128xf32>
    %18 = arith.select %13, %16, %17 : vector<8x128xi1>, vector<8x128xf32>
    %c0_5 = arith.constant 0 : index
    %c0_6 = arith.constant 0 : index
    %19 = vector.load %arg6[%c0_5, %c0_6] : memref<8x1xf32, #tpu.memory_space<vmem>>, vector<8x1xf32>
    %cst_7 = arith.constant dense<0.000000e+00> : vector<8xf32>
    %20 = vector.multi_reduction <add>, %18, %cst_7 [1] : vector<8x128xf32> to vector<8xf32>
    %21 = vector.shape_cast %20 : vector<8xf32> to vector<8x1xf32>
    %22 = arith.addf %19, %21 : vector<8x1xf32>
    %c0_8 = arith.constant 0 : index
    %c0_9 = arith.constant 0 : index
    %23 = vector.load %arg6[%c0_8, %c0_9] : memref<8x1xf32, #tpu.memory_space<vmem>>, vector<8x1xf32>
    tpu.vector_store %arg6[%c0_8, %c0_9], %22 {strides = array<i32>} : memref<8x1xf32, #tpu.memory_space<vmem>>, vector<8x1xf32>,
    %c0_i32_10 = arith.constant 0 : i32
    %24 = arith.cmpi eq, %arg1, %c0_i32_10 : i32
    %25 = arith.extui %24 : i1 to i32
    %c0_i32_11 = arith.constant 0 : i32
    %26 = arith.cmpi ne, %25, %c0_i32_11 : i32
    scf.if %26 {
      %c0_12 = arith.constant 0 : index
      %c0_13 = arith.constant 0 : index
      %27 = vector.load %arg3[%c0_12, %c0_13] : memref<8x1xf32, #tpu.memory_space<vmem>>, vector<8x1xf32>
      %28 = math.exp %27 : vector<8x1xf32>
      %c0_14 = arith.constant 0 : index
      %c0_15 = arith.constant 0 : index
      %29 = vector.load %arg6[%c0_14, %c0_15] : memref<8x1xf32, #tpu.memory_space<vmem>>, vector<8x1xf32>
      %30 = arith.addf %28, %29 : vector<8x1xf32>
      %31 = math.log %30 : vector<8x1xf32>
      %32 = arith.subf %27, %31 : vector<8x1xf32>
      %c0_16 = arith.constant 0 : index
      %c0_17 = arith.constant 0 : index
      %33 = vector.load %arg5[%c0_16, %c0_17] : memref<8x1xf32, #tpu.memory_space<vmem>>, vector<8x1xf32>
      tpu.vector_store %arg5[%c0_16, %c0_17], %32 {strides = array<i32>} : memref<8x1xf32, #tpu.memory_space<vmem>>, vector<8x1xf32>,
    } else {
    }
    return
  }
  func.func @transform_0(%arg0: i32, %arg1: i32) -> (i32, i32) {
    %c0_i32 = arith.constant 0 : i32
    %c0_i32_0 = arith.constant 0 : i32
    return %arg0, %c0_i32 : i32, i32
  }
  func.func @transform_1(%arg0: i32, %arg1: i32) -> (i32, i32) {
    %c0_i32 = arith.constant 0 : i32
    %c0_i32_0 = arith.constant 0 : i32
    return %arg0, %c0_i32 : i32, i32
  }
  func.func @transform_2(%arg0: i32, %arg1: i32) -> (i32, i32) {
    %c0_i32 = arith.constant 0 : i32
    return %arg0, %arg1 : i32, i32
  }
  func.func @transform_3(%arg0: i32, %arg1: i32) -> (i32, i32) {
    %c0_i32 = arith.constant 0 : i32
    %c0_i32_0 = arith.constant 0 : i32
    return %arg0, %c0_i32 : i32, i32
  }
}

</mosaic_0001>

<bundles_post_ra>
// kernel: tpu_custom_call.1
= control target key start
LH: loop header
LB: loop body
LE: loop exit
PB: predicated region body
PF: predicated region fallthrough
CT: control target
= control target key end

     0   :  { %v68_v0 = vmov 0   ;;  %vm18_vm0 = vcmask 7168   ;;  %v69_v2 = vmov 0.0   ;;  %v23_v6 = vlaneseq  ;;  %s105_s0 = inlined_call_operand.vmem [shape: s32[8,1], index: 0, kind: input, shape index: {}]   ;;  %s106_s2 = inlined_call_operand.vmem [shape: f32[8,16], index: 2, kind: input, shape index: {}]   ;;  %s107_s1 = inlined_call_operand.vmem [shape: f32[8,1], index: 1, kind: input, shape index: {}]   ;;  %s108_s3 = inlined_call_operand.vmem [shape: f32[8,1], index: 3, kind: output, shape index: {}]  }
   0x1   :  { %61 = vset.pattern.permute.xlu0 %v68_v0  ;;  %v21_v1 = vld [vmem:[%s105_s0] sm:$0xff]  ;;  %19 = vst.msk [vmem:[#allocation2] sm:$0xff] %vm18_vm0, %v69_v2 }
   0x2   :  { %28 = vperm.xlu0 %61, %v21_v1   ;;  %v20_v3 = vld [vmem:[%s106_s2] sm:$0xff]  ;;  %v24_v7 = vand.u32 127, %v23_v6 }
   0x3   :  { %v33_v4 = vmul.f32 30.0, %v20_v3  ;;  %v46_v11 = vld [vmem:[%s107_s1] sm:$0xff] }
   0x4   :  { %vm31_vm1 = vcmp.lt.s32.totalorder %v24_v7, 16  ;;  %v47_v12 = vmul.f32 1.442695, %v46_v11 }
   0x5   :  { %v34_v5 = vmul.f32 1.442695, %v33_v4 }
   0x7   :  { %62 = vpow2.f32 %v34_v5 }
   0x8   :  { %64 = vpow2.f32 %v47_v12  ;;  %v37_v13 = vld [vmem:[#allocation2] sm:$0xff] }
  0x14   :  { %v63_v8 = vpop.eup %62 }
  0x15   :  { %v65_v16 = vpop.eup %64 }
  0x7d   :  { %v29_v9 = vpop.permute.xlu0 %28 }
  0x7e   :  { %vm30_vm2 = vcmp.ne.s32.totalorder %v24_v7, %v29_v9 }
  0x7f   :  { %vm32_vm3 = vmand %vm30_vm2, %vm31_vm1 }
  0x80   :  { %v36_v10 = vsel %vm32_vm3, %v63_v8, 0.0 }
  0x81   :  { %38 = vadd.xlane.f32.xlu0 %v36_v10 }
 0x10a   :  { %v39_v14 = vpop.xlane.xlu0 %38 }
 0x10b   :  { %v40_v15 = vadd.f32 %v39_v14, %v37_v13 }
 0x10d   :  { %42 = vst.msk [vmem:[#allocation2] sm:$0xff] %vm18_vm0, %v40_v15 }
 0x114   :  { %v49_v17 = vld [vmem:[#allocation2] sm:$0xff] }
 0x115   :  { %v50_v18 = vadd.f32 %v65_v16, %v49_v17 }
 0x117   :  { %66 = vlog2.f32 %v50_v18 }
 0x124   :  { %v67_v19 = vpop.eup %66 }
 0x125   :  { %v52_v20 = vmul.f32 0.6931472, %v67_v19 }
 0x127   :  { %v53_v21 = vsub.f32 %v46_v11, %v52_v20 }
 0x129   :  { %54 = vst.msk [vmem:[%s108_s3] sm:$0xff] %vm18_vm0, %v53_v21 }

</bundles_post_ra>
